<compile_context>
chip_gen: v6e
topology: v6e:2x2x1
jax: 0.10.0
libtpu: 0.0.40
codegen_flags: <defaults>
</compile_context>

<pallas_src>
import functools

import jax
import jax.numpy as jnp
from jax.experimental import pallas as pl
from jax.experimental.pallas import tpu as pltpu


def _jaccard_kernel(labels_ref, logits_ref, gumbel_ref, out_ref, *,
                    eps, n_valid, tile_n, approx_recip):
    # All partial'd parameters are plain Python scalars (no captured jax-array
    # constants -> fixes the "captures constants [f32[]]" tracing error).
    i = pl.program_id(0)

    labels = labels_ref[...]      # (1, T) int32, samples on lanes
    logits = logits_ref[...]      # (C, T) f32, classes on sublanes
    g = gumbel_ref[...]           # (C, T) f32

    C, T = logits.shape

    # gumbel_softmax (tau=1, soft) over the class (sublane) axis
    z = logits + g
    z = z - jnp.max(z, axis=0, keepdims=True)          # 8-sublane reduce
    e = jnp.exp(z)                                      # EUP
    denom = jnp.sum(e, axis=0, keepdims=True)           # 8-sublane reduce
    y = e * pl.reciprocal(denom, approx=approx_recip)   # (C, T), >= 0

    # masked one-hot: F.one_hot(labels, C) * (labels != 0)
    class_ids = jax.lax.broadcasted_iota(jnp.int32, (C, T), 0)
    onehot = ((class_ids == labels) & (labels != 0)).astype(jnp.float32)

    # both operands are non-negative, so abs() is the identity
    inter = onehot * y
    union = onehot + y - inter
    jacc = (inter + eps) * pl.reciprocal(union + eps, approx=approx_recip)

    # zero out padded samples past the true N (ragged last tile support)
    col = jax.lax.broadcasted_iota(jnp.int32, (1, T), 1)
    valid = (i * tile_n + col) < n_valid
    jacc = jnp.where(valid, jacc, 0.0)

    # per-sample partial sums; lane-dense (1, T) output row, no scalar carry
    out_ref[...] = jnp.sum(jacc, axis=0, keepdims=True)


def jaccard_loss(labels, logits, gumbel_noise, eps=1e-10, tile_n=8192,
                 approx_recip=False):
    """labels: int array (any shape); logits: (..., C); gumbel_noise: (N, C)."""
    C = logits.shape[-1]
    labels_flat = labels.reshape(-1).astype(jnp.int32)             # (N,)
    logits_flat = logits.reshape(-1, C).astype(jnp.float32)        # (N, C)
    gumbel_flat = gumbel_noise.reshape(-1, C).astype(jnp.float32)  # (N, C)
    N = labels_flat.shape[0]

    # Cap the tile so the double-buffered (C, tile_n) f32 input blocks
    # (2 streams x 2 buffers) stay well under the default scoped VMEM even on
    # v7x (64 MiB physical / 32 MiB default scoped).
    vmem_budget = 8 * 1024 * 1024                    # bytes for input blocks
    cap = vmem_budget // (4 * C * 4)                 # samples per tile
    tile_n = max(128, (min(tile_n, cap) // 128) * 128)
    # Clamp to the (128-aligned) problem size so small inputs don't over-pad.
    tile_n = min(tile_n, pl.cdiv(N, 128) * 128)

    n_pad = pl.cdiv(N, tile_n) * tile_n
    if n_pad != N:
        pad = n_pad - N
        labels_flat = jnp.pad(labels_flat, (0, pad))
        logits_flat = jnp.pad(logits_flat, ((0, pad), (0, 0)))
        gumbel_flat = jnp.pad(gumbel_flat, ((0, pad), (0, 0)))

    # lane-dense layout: classes -> sublanes, samples -> lanes
    labels_cn = labels_flat.reshape(1, n_pad)        # (1, Npad)
    logits_cn = logits_flat.T                        # (C, Npad)
    gumbel_cn = gumbel_flat.T                        # (C, Npad)

    num_blocks = n_pad // tile_n
    kernel = functools.partial(
        _jaccard_kernel, eps=float(eps), n_valid=int(N), tile_n=int(tile_n),
        approx_recip=bool(approx_recip))

    partials = pl.pallas_call(
        kernel,
        out_shape=jax.ShapeDtypeStruct((num_blocks, tile_n), jnp.float32),
        grid_spec=pltpu.PrefetchScalarGridSpec(
            num_scalar_prefetch=0,
            grid=(num_blocks,),
            in_specs=[
                pl.BlockSpec((1, tile_n), lambda i: (0, i)),
                pl.BlockSpec((C, tile_n), lambda i: (0, i)),
                pl.BlockSpec((C, tile_n), lambda i: (0, i)),
            ],
            out_specs=pl.BlockSpec((1, tile_n), lambda i: (i, 0)),
        ),
        compiler_params=pltpu.CompilerParams(
            dimension_semantics=("parallel",)),
    )(labels_cn, logits_cn, gumbel_cn)

    # tiny final reduce + mean over the true (unpadded) element count
    return jnp.sum(partials) / float(N * C)


def _reference(labels, logits, gumbel_noise, eps=1e-10):
    C = logits.shape[-1]
    labels_f = labels.reshape(-1)
    logits_f = logits.reshape(-1, C).astype(jnp.float32)
    mask = (labels_f != 0).astype(jnp.float32)[:, None]
    onehot = jax.nn.one_hot(labels_f, C, dtype=jnp.float32) * mask
    y = jax.nn.softmax(logits_f + gumbel_noise.reshape(-1, C), axis=-1)
    inter = jnp.abs(onehot * y)
    s = jnp.abs(onehot) + jnp.abs(y)
    union = s - inter
    return jnp.mean((inter + eps) / (union + eps))


if __name__ == "__main__":
    key = jax.random.PRNGKey(0)
    k_lab, k_log, k_gum = jax.random.split(key, 3)

    B, S, C = 2, 64, 8          # N = B * S = 128 flattened positions
    labels = jax.random.randint(k_lab, (B, S), 0, C, dtype=jnp.int32)
    logits = jax.random.normal(k_log, (B, S, C), dtype=jnp.float32)
    # gumbel noise generated once (deterministic) and shared with the reference
    gumbel_noise = jax.random.gumbel(k_gum, (B * S, C), dtype=jnp.float32)

    loss = jax.block_until_ready(jaccard_loss(labels, logits, gumbel_noise))
    ref = _reference(labels, logits, gumbel_noise)
    assert jnp.allclose(loss, ref, atol=1e-5, rtol=1e-5), (loss, ref)

    # ragged case: N = 100 (not a multiple of 128) exercises the tail mask
    B2, S2 = 2, 50
    labels2 = jax.random.randint(k_lab, (B2, S2), 0, C, dtype=jnp.int32)
    logits2 = jax.random.normal(k_log, (B2, S2, C), dtype=jnp.float32)
    gumbel2 = jax.random.gumbel(k_gum, (B2 * S2, C), dtype=jnp.float32)
    loss2 = jax.block_until_ready(jaccard_loss(labels2, logits2, gumbel2))
    ref2 = _reference(labels2, logits2, gumbel2)
    assert jnp.allclose(loss2, ref2, atol=1e-5, rtol=1e-5), (loss2, ref2)

    print("KERNEL_OK")
</pallas_src>

<mosaic_0001>
module attributes {stable_mosaic.version = 11 : i64} {
  func.func @_jaccard_kernel(%arg0: i32, %arg1: memref<1x128xi32, #tpu.memory_space<vmem>>, %arg2: memref<8x128xf32, #tpu.memory_space<vmem>>, %arg3: memref<8x128xf32, #tpu.memory_space<vmem>>, %arg4: memref<1x128xf32, #tpu.memory_space<vmem>>) attributes {dimension_semantics = [#tpu.dimension_semantics<parallel>], iteration_bounds = array<i64: 1>, scalar_prefetch = 0 : i64, scratch_operands = 0 : i64, tpu.core_type = #tpu.core_type<tc>, window_params = [{transform_indices = @transform_0, window_bounds = array<i64: 1, 128>}, {transform_indices = @transform_1, window_bounds = array<i64: 8, 128>}, {transform_indices = @transform_2, window_bounds = array<i64: 8, 128>}, {transform_indices = @transform_3, window_bounds = array<i64: 1, 128>}]} {
    %c0 = arith.constant 0 : index
    %c0_0 = arith.constant 0 : index
    %0 = vector.load %arg1[%c0, %c0_0] : memref<1x128xi32, #tpu.memory_space<vmem>>, vector<1x128xi32>
    %c0_1 = arith.constant 0 : index
    %c0_2 = arith.constant 0 : index
    %1 = vector.load %arg2[%c0_1, %c0_2] : memref<8x128xf32, #tpu.memory_space<vmem>>, vector<8x128xf32>
    %c0_3 = arith.constant 0 : index
    %c0_4 = arith.constant 0 : index
    %2 = vector.load %arg3[%c0_3, %c0_4] : memref<8x128xf32, #tpu.memory_space<vmem>>, vector<8x128xf32>
    %3 = arith.addf %1, %2 : vector<8x128xf32>
    %cst = arith.constant dense<0xFF800000> : vector<128xf32>
    %4 = vector.multi_reduction <maximumf>, %3, %cst [0] : vector<8x128xf32> to vector<128xf32>
    %5 = vector.shape_cast %4 : vector<128xf32> to vector<1x128xf32>
    %6 = vector.broadcast %5 : vector<1x128xf32> to vector<8x128xf32>
    %7 = arith.subf %3, %6 : vector<8x128xf32>
    %8 = math.exp %7 : vector<8x128xf32>
    %cst_5 = arith.constant dense<0.000000e+00> : vector<128xf32>
    %9 = vector.multi_reduction <add>, %8, %cst_5 [0] : vector<8x128xf32> to vector<128xf32>
    %10 = vector.shape_cast %9 : vector<128xf32> to vector<1x128xf32>
    %11 = tpu.reciprocal %10 : vector<1x128xf32> -> vector<1x128xf32>
    %12 = vector.broadcast %11 : vector<1x128xf32> to vector<8x128xf32>
    %13 = arith.mulf %8, %12 : vector<8x128xf32>
    %14 = tpu.iota {dimensions = array<i32: 0>} : vector<8x128xi32>
    %15 = vector.broadcast %0 : vector<1x128xi32> to vector<8x128xi32>
    %16 = arith.cmpi eq, %14, %15 : vector<8x128xi32>
    %c0_i32 = arith.constant 0 : i32
    %17 = vector.broadcast %c0_i32 : i32 to vector<1x128xi32>
    %18 = arith.cmpi ne, %0, %17 : vector<1x128xi32>
    %19 = vector.broadcast %18 : vector<1x128xi1> to vector<8x128xi1>
    %20 = arith.andi %16, %19 : vector<8x128xi1>
    %21 = arith.extui %20 : vector<8x128xi1> to vector<8x128xi32>
    %22 = arith.sitofp %21 : vector<8x128xi32> to vector<8x128xf32>
    %23 = arith.mulf %22, %13 : vector<8x128xf32>
    %24 = arith.addf %22, %13 : vector<8x128xf32>
    %25 = arith.subf %24, %23 : vector<8x128xf32>
    %cst_6 = arith.constant 1.000000e-10 : f32
    %26 = vector.broadcast %cst_6 : f32 to vector<8x128xf32>
    %27 = arith.addf %23, %26 : vector<8x128xf32>
    %cst_7 = arith.constant 1.000000e-10 : f32
    %28 = vector.broadcast %cst_7 : f32 to vector<8x128xf32>
    %29 = arith.addf %25, %28 : vector<8x128xf32>
    %30 = tpu.reciprocal %29 : vector<8x128xf32> -> vector<8x128xf32>
    %31 = arith.mulf %27, %30 : vector<8x128xf32>
    %32 = tpu.iota {dimensions = array<i32: 1>} : vector<1x128xi32>
    %c128_i32 = arith.constant 128 : i32
    %33 = arith.muli %arg0, %c128_i32 : i32
    %34 = vector.broadcast %33 : i32 to vector<1x128xi32>
    %35 = arith.addi %34, %32 : vector<1x128xi32>
    %c128_i32_8 = arith.constant 128 : i32
    %36 = vector.broadcast %c128_i32_8 : i32 to vector<1x128xi32>
    %37 = arith.cmpi slt, %35, %36 : vector<1x128xi32>
    %cst_9 = arith.constant 0.000000e+00 : f32
    %38 = vector.shape_cast %37 : vector<1x128xi1> to vector<1x128xi1>
    %39 = vector.broadcast %38 : vector<1x128xi1> to vector<8x128xi1>
    %40 = vector.broadcast %cst_9 : f32 to vector<8x128xf32>
    %41 = arith.select %39, %31, %40 : vector<8x128xi1>, vector<8x128xf32>
    %cst_10 = arith.constant dense<0.000000e+00> : vector<128xf32>
    %42 = vector.multi_reduction <add>, %41, %cst_10 [0] : vector<8x128xf32> to vector<128xf32>
    %43 = vector.shape_cast %42 : vector<128xf32> to vector<1x128xf32>
    %c0_11 = arith.constant 0 : index
    %c0_12 = arith.constant 0 : index
    %44 = vector.load %arg4[%c0_11, %c0_12] : memref<1x128xf32, #tpu.memory_space<vmem>>, vector<1x128xf32>
    tpu.vector_store %arg4[%c0_11, %c0_12], %43 {strides = array<i32>} : memref<1x128xf32, #tpu.memory_space<vmem>>, vector<1x128xf32>,
    return
  }
  func.func @transform_0(%arg0: i32) -> (i32, i32) {
    %c0_i32 = arith.constant 0 : i32
    %c0_i32_0 = arith.constant 0 : i32
    return %c0_i32, %arg0 : i32, i32
  }
  func.func @transform_1(%arg0: i32) -> (i32, i32) {
    %c0_i32 = arith.constant 0 : i32
    %c0_i32_0 = arith.constant 0 : i32
    return %c0_i32, %arg0 : i32, i32
  }
  func.func @transform_2(%arg0: i32) -> (i32, i32) {
    %c0_i32 = arith.constant 0 : i32
    %c0_i32_0 = arith.constant 0 : i32
    return %c0_i32, %arg0 : i32, i32
  }
  func.func @transform_3(%arg0: i32) -> (i32, i32) {
    %c0_i32 = arith.constant 0 : i32
    %c0_i32_0 = arith.constant 0 : i32
    return %arg0, %c0_i32 : i32, i32
  }
}

</mosaic_0001>

<bundles_post_ra>
// kernel: tpu_custom_call.1
= control target key start
LH: loop header
LB: loop body
LE: loop exit
PB: predicated region body
PF: predicated region fallthrough
CT: control target
= control target key end

     0   :  { %8 = vsyncpa [#allocation3], 0  ;;  %s264_s0 = inlined_call_operand.hbm [shape: s32[1,128], index: 0, kind: input, shape index: {}]   ;;  %s265_s1 = inlined_call_operand.hbm [shape: f32[8,128], index: 1, kind: input, shape index: {}]   ;;  %s266_s2 = inlined_call_operand.hbm [shape: f32[8,128], index: 2, kind: input, shape index: {}]   ;;  %s267_s3 = inlined_call_operand.hbm [shape: f32[1,128], index: 3, kind: output, shape index: {}]  }
   0x1   :  { %9 = vsyncpa [#allocation6], 0 }
   0x2   :  { %10 = vsyncpa [#allocation4], 0  ;;  %s226_s12 = smov [#allocation5]   ;;  %s227_s14 = smov [#allocation2]  }
   0x3   :  { %s27_s13 = sshll.u32 %s226_s12, 4  ;;  %s17_s15 = sshll.u32 %s227_s14, 4  ;;  %s28_s13 = int_to_ptr.vmem [resolvable:$true] %s27_s13  ;;  %s18_s15 = int_to_ptr.vmem [resolvable:$true] %s17_s15 }
   0x4   :  { %s148_s16 = scalar_lea.vmem %s28_s13, 128  ;;  %p153_p1 = scmp.lt.s32.totalorder %s28_s13, %s28_s13 }
   0x5   :  { %p149_p0 = scmp.ne.s32.totalorder %s28_s13, %s148_s16  ;;  %p154_p2 = scmp.lt.s32.totalorder %s148_s16, %s148_s16 }
   0x7   :  { %p155_p3 = por %p154_p2, %p153_p1 }
   0x9   :  { %p156_p4 = pnand %p155_p3, %p149_p0 }
   0xb   :  { %159 = shalt.err (!%p156_p4)
}
   0xc   :  { %30 = dma.hbm_to_vmem [thread:$0]  %s265_s1, 128, %s28_s13, [#allocation6]  }
   0xd   :  { %s168_s19 = scalar_lea.vmem %s18_s15, 16  ;;  %s172_s20 = scalar_lea.vmem %s18_s15, 32 }
   0xe   :  { %p169_p5 = scmp.ne.s32.totalorder %s18_s15, %s168_s19  ;;  %p173_p6 = scmp.lt.s32.totalorder %s18_s15, %s18_s15 }
   0xf   :  { %p174_p7 = scmp.lt.s32.totalorder %s172_s20, %s168_s19 }
  0x11   :  { %p175_p8 = por %p174_p7, %p173_p6 }
  0x13   :  { %p176_p9 = pnand %p175_p8, %p169_p5 }
  0x15   :  { %179 = shalt.err (!%p176_p9)
}
  0x16   :  { %20 = dma.hbm_to_vmem [thread:$0]  %s264_s0, 16, %s18_s15, [#allocation3]  }
  0x17   :  { %s228_s23 = smov [#allocation7]  }
  0x18   :  { %s37_s24 = sshll.u32 %s228_s23, 4  ;;  %s38_s24 = int_to_ptr.vmem [resolvable:$true] %s37_s24 }
  0x19   :  { %s188_s25 = scalar_lea.vmem %s38_s24, 128  ;;  %p193_p11 = scmp.lt.s32.totalorder %s38_s24, %s38_s24 }
  0x1a   :  { %p189_p10 = scmp.ne.s32.totalorder %s38_s24, %s188_s25  ;;  %p194_p12 = scmp.lt.s32.totalorder %s188_s25, %s188_s25 }
  0x1c   :  { %p195_p13 = por %p194_p12, %p193_p11 }
  0x1e   :  { %p196_p0 = pnand %p195_p13, %p189_p10 }
  0x20   :  { %199 = shalt.err (!%p196_p0)
}
  0x21   :  { %40 = dma.hbm_to_vmem [thread:$0]  %s266_s2, 128, %s38_s24, [#allocation6]  }
  0x22   :  { %220 = dma.done.wait [#allocation3], 16  }
  0x23   :  { %221 = vsyncadd [#allocation3], 4294967280 }
  0x24   :  { %222 = dma.done.wait [#allocation6], 256  }
  0x25   :  { %223 = vsyncadd [#allocation6], 4294967040  ;;  %v51_v0 = vld [vmem:[#allocation5] sm:$0xff]  ;;  %v52_v1 = vld [vmem:[#allocation7] sm:$0xff]  ;;  %v71_v14 = vlaneseq  ;;  %v229_v22 = vmov 0   ;;  %v230_v27 = vmov 0.0  }
  0x26   :  { %v53_v2 = vadd.f32 %v52_v1, %v51_v0  ;;  %v50_v16 = vld [vmem:[#allocation2] sm:$0x1]  ;;  %s231_s0 = smov [#allocation8]  }
  0x27   :  { %v72_v18 = vshrl.u32 %v71_v14, 7  ;;  %vm78_vm0 = vcmp.ne.s32.totalorder %v50_v16, 0  ;;  %s117_s2 = sshll.u32 %s231_s0, 4  ;;  %s118_s2 = int_to_ptr.vmem [resolvable:$true] %s117_s2 }
  0x28   :  { %v54_v3 = vrot.slane %v53_v2, 4  ;;  %v79_v23 = vsel %vm78_vm0, 1, %v229_v22  ;;  %s200_s27 = scalar_lea.vmem %s118_s2, 16  ;;  %s204_s28 = scalar_lea.vmem %s118_s2, 32 }
  0x29   :  { %v75_v21 = vsub.s32 0, %v72_v18  ;;  %p201_p1 = scmp.ne.s32.totalorder %s118_s2, %s200_s27  ;;  %p205_p2 = scmp.lt.s32.totalorder %s118_s2, %s118_s2 }
  0x2a   :  { %v55_v4 = vmax.f32 %v53_v2, %v54_v3  ;;  %p206_p3 = scmp.lt.s32.totalorder %s204_s28, %s200_s27 }
  0x2b   :  { %v76_v24 = vrot.slane %v50_v16, %v75_v21  ;;  %v83_v25 = vrot.slane %v79_v23, %v75_v21 }
  0x2c   :  { %v56_v5 = vrot.slane %v55_v4, 2  ;;  %p207_p4 = por %p206_p3, %p205_p2 }
  0x2d   :  { %vm77_vm1 = vcmp.eq.s32.totalorder %v72_v18, %v76_v24  ;;  %vm84_vm2 = vcmp.eq.s32.totalorder %v83_v25, 1 }
  0x2e   :  { %v57_v6 = vmax.f32 %v55_v4, %v56_v5  ;;  %vm85_vm3 = vmand %vm77_vm1, %vm84_vm2  ;;  %p208_p5 = pnand %p207_p4, %p201_p1 }
  0x2f   :  { %v127_v28 = vsel %vm85_vm3, 1.0, %v230_v27 }
  0x30   :  { %v58_v7 = vrot.slane %v57_v6, 1 }
  0x32   :  { %v59_v8 = vmax.f32 %v57_v6, %v58_v7 }
  0x34   :  { %v60_v9 = vsub.f32 %v53_v2, %v59_v8 }
  0x36   :  { %v61_v10 = vmul.f32 1.442695, %v60_v9 }
  0x38   :  { %134 = vpow2.f32 %v61_v10 }
  0x45   :  { %v135_v11 = vpop.eup %134 }
  0x46   :  { %v63_v12 = vrot.slane %v135_v11, 4 }
  0x48   :  { %v64_v13 = vadd.f32 %v135_v11, %v63_v12 }
  0x4a   :  { %v65_v15 = vrot.slane %v64_v13, 2 }
  0x4c   :  { %v66_v17 = vadd.f32 %v65_v15, %v64_v13 }
  0x4e   :  { %v67_v19 = vrot.slane %v66_v17, 1 }
  0x50   :  { %v68_v20 = vadd.f32 %v67_v19, %v66_v17 }
  0x52   :  { %136 = vrcp.f32 %v68_v20 }
  0x5f   :  { %v137_v26 = vpop.eup %136 }
  0x60   :  { %v70_v29 = vmul.f32 %v137_v26, %v135_v11 }
  0x62   :  { %v88_v30 = vmul.f32 %v127_v28, %v70_v29  ;;  %v89_v31 = vadd.f32 %v127_v28, %v70_v29 }
  0x64   :  { %v90_v32 = vsub.f32 %v89_v31, %v88_v30  ;;  %v91_v34 = vadd.f32 1e-10, %v88_v30 }
  0x66   :  { %v92_v33 = vadd.f32 1e-10, %v90_v32 }
  0x68   :  { %138 = vrcp.f32 %v92_v33 }
  0x75   :  { %v139_v35 = vpop.eup %138 }
  0x76   :  { %v94_v36 = vmul.f32 %v139_v35, %v91_v34 }
  0x78   :  { %v104_v37 = vrot.slane %v94_v36, 4 }
  0x7a   :  { %v105_v38 = vadd.f32 %v104_v37, %v94_v36 }
  0x7c   :  { %v106_v39 = vrot.slane %v105_v38, 2 }
  0x7e   :  { %v107_v40 = vadd.f32 %v106_v39, %v105_v38 }
  0x80   :  { %v108_v41 = vrot.slane %v107_v40, 1 }
  0x82   :  { %v109_v42 = vadd.f32 %v108_v41, %v107_v40 }
  0x84   :  { %110 = vst [vmem:[#allocation8] sm:$0x1] %v109_v42 }
  0x85   :  { %211 = shalt.err (!%p208_p5)
}
  0x86   :  { %120 = dma.vmem_to_hbm [thread:$0]  %s118_s2, 16, %s267_s3, [#allocation4]  }
  0x87   :  { %224 = dma.done.wait [#allocation4], 16  }
  0x88   :  { %225 = vsyncadd [#allocation4], 4294967280 }
  0x89   :  { %124 = vsyncpa [#allocation3], 1 }
  0x8a   :  { %125 = vsyncpa [#allocation6], 1 }
  0x8b   :  { %126 = vsyncpa [#allocation4], 1 }

</bundles_post_ra>
